<compile_context>
chip_gen: v7x
topology: tpu7x:2x2x1
jax: 0.10.0
libtpu: 0.0.40
codegen_flags: <defaults>
</compile_context>

<pallas_src>
import re

import jax
import jax.numpy as jnp
from jax.experimental import pallas as pl
from jax.experimental.pallas import tpu as pltpu


def _round_up(x: int, m: int) -> int:
    return ((x + m - 1) // m) * m


def _cdiv(a: int, b: int) -> int:
    return -(-a // b)


def _tpu_generation() -> int:
    """Best-effort TPU generation from device_kind; falls back to 6 (conservative)."""
    try:
        kind = str(jax.devices()[0].device_kind).lower()
        m = re.search(r"v(\d+)", kind)
        if m:
            return int(m.group(1))
    except Exception:
        pass
    return 6


def _make_kernel(R: int, TILE_R: int, r_tiles_per_split: int, needs_mask: bool):
    def kernel(x_ref, o_ref, acc_ref):
        ri = pl.program_id(2)  # reduction (row-tile) axis, innermost

        @pl.when(ri == 0)
        def _():
            acc_ref[...] = jnp.zeros_like(acc_ref)

        # Cast in-kernel (free VPU work under the HBM bound).
        x = x_ref[...].astype(jnp.float32)

        if needs_mask:
            # Zero rows that fall past the logical row count R (partial edge tile and any
            # duplicated tile produced by the clamped index_map on the SPLIT path).
            row0 = (pl.program_id(0) * r_tiles_per_split + ri) * TILE_R
            rows = row0 + jax.lax.broadcasted_iota(jnp.int32, (TILE_R, 1), 0)
            x = jnp.where(rows < R, x, 0.0)

        # Fold the (TILE_R, TILE_W) tile onto the (8, TILE_W) accumulator with pure
        # elementwise adds (no per-step cross-sublane reduce).
        tr, tw = x.shape
        acc_ref[...] += jnp.sum(x.reshape(tr // 8, 8, tw), axis=0)

        @pl.when(ri == pl.num_programs(2) - 1)
        def _():
            # One final sublane (XLU) reduce per output block.
            o_ref[...] = jnp.sum(acc_ref[...], axis=0, keepdims=True)

    return kernel


def reduce_sum_dims01(a: jax.Array) -> jax.Array:
    """Equivalent of torch.sum(a, (0, 1), dtype=torch.float32) for a rank-3 input."""
    assert a.ndim == 3, "ReduceSumDimIntListDtypeModule expects a rank-3 input"
    B, H, W = a.shape
    R = B * H
    x = a.reshape(R, W)  # reduction over (0, 1) == row reduction over a lane-dense 2D slab
    itemsize = jnp.dtype(x.dtype).itemsize

    gen = _tpu_generation()
    if gen >= 7:          # v7x: 3.2 TB/s HBM, 64 MiB VMEM, 2 TensorCores
        budget_bytes = 16 << 20
        vmem_limit = 48 << 20
        max_split = 2
    elif gen == 6:        # v6e
        budget_bytes = 8 << 20
        vmem_limit = 32 << 20
        max_split = 1
    else:                 # v5e and older
        budget_bytes = 4 << 20
        vmem_limit = 24 << 20
        max_split = 1

    # ---- lane tiling: full-extent W (one contiguous DMA slab) unless W is very large ----
    if W > 4096 and W % 2048 == 0:
        TILE_W = 2048
    else:
        TILE_W = W
    num_w_tiles = W // TILE_W

    # ---- row tiling: large tiles (budget_bytes per input tile), multiple of 8 ----
    TILE_R = max(8, (budget_bytes // max(TILE_W * itemsize, 1)) // 8 * 8)
    TILE_R = min(TILE_R, _round_up(R, 8))

    nt_total = _cdiv(R, TILE_R)
    SPLIT = 2 if (max_split == 2 and nt_total >= 2) else 1
    if SPLIT > 1:
        # Keep per-split masked waste to at most one tile.
        TILE_R = min(TILE_R, _round_up(_cdiv(R, SPLIT), 8))
        nt_total = _cdiv(R, TILE_R)
    r_tiles_per_split = _cdiv(nt_total, SPLIT)

    needs_mask = (SPLIT * r_tiles_per_split * TILE_R) != R

    def in_index_map(s, wi, ri):
        blk = s * r_tiles_per_split + ri
        if SPLIT > 1:
            # Clamp to a valid block; any duplicated rows are masked to zero in-kernel.
            blk = jnp.minimum(blk, nt_total - 1)
        return (blk, wi)

    grid = (SPLIT, num_w_tiles, r_tiles_per_split)

    if SPLIT > 1:
        dim_sem = (pltpu.CORE_PARALLEL, pltpu.PARALLEL, pltpu.ARBITRARY)
    else:
        dim_sem = ("parallel", "parallel", "arbitrary")

    partials = pl.pallas_call(
        _make_kernel(R, TILE_R, r_tiles_per_split, needs_mask),
        out_shape=jax.ShapeDtypeStruct((SPLIT, W), jnp.float32),
        grid_spec=pltpu.PrefetchScalarGridSpec(
            num_scalar_prefetch=0,
            grid=grid,
            in_specs=[pl.BlockSpec((TILE_R, TILE_W), in_index_map)],
            out_specs=pl.BlockSpec((1, TILE_W), lambda s, wi, ri: (s, wi)),
            scratch_shapes=[pltpu.VMEM((8, TILE_W), jnp.float32)],
        ),
        compiler_params=pltpu.CompilerParams(
            dimension_semantics=dim_sem,
            vmem_limit_bytes=vmem_limit,
        ),
        cost_estimate=pl.CostEstimate(
            flops=R * W,
            transcendentals=0,
            bytes_accessed=R * W * itemsize + SPLIT * W * 4,
        ),
    )(x)

    if SPLIT == 1:
        return partials[0]
    # Combine the (at most 2) per-core partial sums -> (W,) float32.
    return jnp.sum(partials, axis=0)


if __name__ == "__main__":
    key = jax.random.PRNGKey(0)

    # Case 1: small rank-3 shape with ragged rows (3*5=15) and ragged last dim (40)
    # -> exercises the in-kernel tail-row mask and full-extent lane tiling.
    x1 = jax.random.normal(key, (3, 5, 40), dtype=jnp.float32)
    r1 = reduce_sum_dims01(x1)
    jax.block_until_ready(r1)
    e1 = jnp.sum(x1.astype(jnp.float32), axis=(0, 1))
    assert r1.shape == e1.shape and r1.dtype == jnp.float32
    assert jnp.allclose(r1, e1, rtol=1e-5, atol=1e-5)

    # Case 2: rows divide the tile layout exactly (4*16=64) -> unmasked fast path.
    x2 = jax.random.normal(jax.random.PRNGKey(1), (4, 16, 256), dtype=jnp.float32)
    r2 = reduce_sum_dims01(x2)
    jax.block_until_ready(r2)
    e2 = jnp.sum(x2.astype(jnp.float32), axis=(0, 1))
    assert r2.shape == e2.shape and r2.dtype == jnp.float32
    assert jnp.allclose(r2, e2, rtol=1e-5, atol=1e-4)

    print("KERNEL_OK")
</pallas_src>

<mosaic_0001>
module attributes {stable_mosaic.version = 11 : i64} {
  func.func @kernel(%arg0: i32, %arg1: i32, %arg2: i32, %arg3: memref<16x40xf32, #tpu.memory_space<vmem>>, %arg4: memref<1x40xf32, #tpu.memory_space<vmem>>, %arg5: memref<8x40xf32, #tpu.memory_space<vmem>>) attributes {dimension_semantics = [#tpu.dimension_semantics<parallel>, #tpu.dimension_semantics<parallel>, #tpu.dimension_semantics<arbitrary>], iteration_bounds = array<i64: 1, 1, 1>, scalar_prefetch = 0 : i64, scratch_operands = 1 : i64, tpu.core_type = #tpu.core_type<tc>, window_params = [{transform_indices = @transform_0, window_bounds = array<i64: 16, 40>}, {transform_indices = @transform_1, window_bounds = array<i64: 1, 40>}]} {
    %c0_i32 = arith.constant 0 : i32
    %0 = arith.cmpi eq, %arg2, %c0_i32 : i32
    %1 = arith.extui %0 : i1 to i32
    %c0_i32_0 = arith.constant 0 : i32
    %2 = arith.cmpi ne, %1, %c0_i32_0 : i32
    scf.if %2 {
      %cst_9 = arith.constant 0.000000e+00 : f32
      %24 = vector.broadcast %cst_9 : f32 to vector<8x40xf32>
      %c0_10 = arith.constant 0 : index
      %c0_11 = arith.constant 0 : index
      %25 = vector.load %arg5[%c0_10, %c0_11] : memref<8x40xf32, #tpu.memory_space<vmem>>, vector<8x40xf32>
      tpu.vector_store %arg5[%c0_10, %c0_11], %24 {strides = array<i32>} : memref<8x40xf32, #tpu.memory_space<vmem>>, vector<8x40xf32>,
    } else {
    }
    %c0 = arith.constant 0 : index
    %c0_1 = arith.constant 0 : index
    %3 = vector.load %arg3[%c0, %c0_1] : memref<16x40xf32, #tpu.memory_space<vmem>>, vector<16x40xf32>
    %c1_i32 = arith.constant 1 : i32
    %4 = arith.muli %arg0, %c1_i32 : i32
    %5 = arith.addi %4, %arg2 : i32
    %c16_i32 = arith.constant 16 : i32
    %6 = arith.muli %5, %c16_i32 : i32
    %7 = tpu.iota {dimensions = array<i32: 0>} : vector<16x1xi32>
    %8 = vector.broadcast %6 : i32 to vector<16x1xi32>
    %9 = arith.addi %8, %7 : vector<16x1xi32>
    %c15_i32 = arith.constant 15 : i32
    %10 = vector.broadcast %c15_i32 : i32 to vector<16x1xi32>
    %11 = arith.cmpi slt, %9, %10 : vector<16x1xi32>
    %cst = arith.constant 0.000000e+00 : f32
    %12 = vector.shape_cast %11 : vector<16x1xi1> to vector<16x1xi1>
    %13 = vector.broadcast %12 : vector<16x1xi1> to vector<16x40xi1>
    %14 = vector.broadcast %cst : f32 to vector<16x40xf32>
    %15 = arith.select %13, %3, %14 : vector<16x40xi1>, vector<16x40xf32>
    %c0_2 = arith.constant 0 : index
    %c0_3 = arith.constant 0 : index
    %16 = vector.load %arg5[%c0_2, %c0_3] : memref<8x40xf32, #tpu.memory_space<vmem>>, vector<8x40xf32>
    %17 = vector.shape_cast %15 : vector<16x40xf32> to vector<2x8x40xf32>
    %cst_4 = arith.constant dense<0.000000e+00> : vector<8x40xf32>
    %18 = vector.multi_reduction <add>, %17, %cst_4 [0] : vector<2x8x40xf32> to vector<8x40xf32>
    %19 = arith.addf %16, %18 : vector<8x40xf32>
    %c0_5 = arith.constant 0 : index
    %c0_6 = arith.constant 0 : index
    %20 = vector.load %arg5[%c0_5, %c0_6] : memref<8x40xf32, #tpu.memory_space<vmem>>, vector<8x40xf32>
    tpu.vector_store %arg5[%c0_5, %c0_6], %19 {strides = array<i32>} : memref<8x40xf32, #tpu.memory_space<vmem>>, vector<8x40xf32>,
    %c0_i32_7 = arith.constant 0 : i32
    %21 = arith.cmpi eq, %arg2, %c0_i32_7 : i32
    %22 = arith.extui %21 : i1 to i32
    %c0_i32_8 = arith.constant 0 : i32
    %23 = arith.cmpi ne, %22, %c0_i32_8 : i32
    scf.if %23 {
      %c0_9 = arith.constant 0 : index
      %c0_10 = arith.constant 0 : index
      %24 = vector.load %arg5[%c0_9, %c0_10] : memref<8x40xf32, #tpu.memory_space<vmem>>, vector<8x40xf32>
      %cst_11 = arith.constant dense<0.000000e+00> : vector<40xf32>
      %25 = vector.multi_reduction <add>, %24, %cst_11 [0] : vector<8x40xf32> to vector<40xf32>
      %26 = vector.shape_cast %25 : vector<40xf32> to vector<1x40xf32>
      %c0_12 = arith.constant 0 : index
      %c0_13 = arith.constant 0 : index
      %27 = vector.load %arg4[%c0_12, %c0_13] : memref<1x40xf32, #tpu.memory_space<vmem>>, vector<1x40xf32>
      tpu.vector_store %arg4[%c0_12, %c0_13], %26 {strides = array<i32>} : memref<1x40xf32, #tpu.memory_space<vmem>>, vector<1x40xf32>,
    } else {
    }
    return
  }
  func.func @transform_0(%arg0: i32, %arg1: i32, %arg2: i32) -> (i32, i32) {
    %c1_i32 = arith.constant 1 : i32
    %0 = arith.muli %arg0, %c1_i32 : i32
    %1 = arith.addi %0, %arg2 : i32
    %c0_i32 = arith.constant 0 : i32
    return %1, %arg1 : i32, i32
  }
  func.func @transform_1(%arg0: i32, %arg1: i32, %arg2: i32) -> (i32, i32) {
    %c0_i32 = arith.constant 0 : i32
    return %arg0, %arg1 : i32, i32
  }
}

</mosaic_0001>

<bundles_post_ra>
// kernel: tpu_custom_call.1
= control target key start
LH: loop header
LB: loop body
LE: loop exit
PB: predicated region body
PF: predicated region fallthrough
CT: control target
= control target key end

     0   :  { %6 = vsyncpa [#allocation4], 0  ;;  %s185_s0 = inlined_call_operand.hbm [shape: f32[15,40], index: 0, kind: input, shape index: {}]   ;;  %s186_s1 = inlined_call_operand.hbm [shape: f32[1,40], index: 1, kind: output, shape index: {}]  }
   0x1   :  { %7 = vsyncpa [#allocation5], 0  ;;  %s141_s6 = smov [#allocation3]   ;;  %s93_s10 = scalar_lea.hbm %s185_s0, 256 }
   0x2   :  { %s17_s7 = sshll.u32 %s141_s6, 4  ;;  %p94_p0 = scmp.ne.s32.totalorder %s185_s0, %s93_s10  ;;  %s18_s7 = int_to_ptr.vmem [resolvable:$true] %s17_s7 }
   0x3   :  { %p97_p1 = scmp.lt.u32.totalorder %s93_s10, %s185_s0 }
   0x5   :  { %p99_p2 = pnand %p97_p1, %p94_p0 }
   0x7   :  { %102 = shalt.err (!%p99_p2)
}
   0x8   :  { %s103_s15 = scalar_lea.vmem %s18_s7, 256  ;;  %p108_p4 = scmp.lt.s32.totalorder %s18_s7, %s18_s7 }
   0x9   :  { %p104_p3 = scmp.ne.s32.totalorder %s18_s7, %s103_s15  ;;  %p109_p5 = scmp.lt.s32.totalorder %s103_s15, %s103_s15 }
   0xb   :  { %p110_p6 = por %p109_p5, %p108_p4 }
   0xd   :  { %p111_p7 = pnand %p110_p6, %p104_p3 }
   0xf   :  { %114 = shalt.err (!%p111_p7)
}
  0x10   :  { %s142_s16 = smov 128   ;;  %s143_s17 = smov 8  }
  0x11   :  { %23 = dma.hbm_to_vmem [thread:$0]  %s185_s0, 256, %s18_s7, [#allocation4], %s142_s16, %s142_s16, %s143_s17  }
  0x12   :  { %137 = dma.done.wait [#allocation4], 256  }
  0x13   :  { %138 = vsyncadd [#allocation4], 4294967040  ;;  %vm33_vm0 = vcmask 326656   ;;  %v39_v0 = vlaneseq  ;;  %v144_v1 = vmov 0.0   ;;  %v35_v4 = vld [vmem:[#allocation3] sm:$0xff]  ;;  %v36_v5 = vld [vmem:[#allocation3 + $0x8] sm:$0xff] }
  0x14   :  { %34 = vst.msk [vmem:[#allocation2] sm:$0xff] %vm33_vm0, %v144_v1  ;;  %v55_v7 = vsel %vm33_vm0, %v35_v4, 0.0  ;;  %s145_s0 = smov [#allocation6]   ;;  %vm71_vm2 = vcmask 319488  }
  0x15   :  { %v40_v2 = vshrl.u32 %v39_v0, 7  ;;  %s79_s20 = sshll.u32 %s145_s0, 4  ;;  %s80_s20 = int_to_ptr.vmem [resolvable:$true] %s79_s20 }
  0x16   :  { %s115_s21 = scalar_lea.vmem %s80_s20, 16  ;;  %s119_s22 = scalar_lea.vmem %s80_s20, 32 }
  0x17   :  { %v41_v3 = vadd.s32 8, %v40_v2  ;;  %p116_p8 = scmp.ne.s32.totalorder %s80_s20, %s115_s21  ;;  %p120_p9 = scmp.lt.s32.totalorder %s80_s20, %s80_s20 }
  0x18   :  { %p121_p10 = scmp.lt.s32.totalorder %s119_s22, %s115_s21 }
  0x19   :  { %vm46_vm1 = vcmp.lt.s32.totalorder %v41_v3, 15 }
  0x1a   :  { %v52_v6 = vsel %vm46_vm1, %v36_v5, 0.0  ;;  %p122_p11 = por %p121_p10, %p120_p9 }
  0x1b   :  { %v53_v8 = vld [vmem:[#allocation2] sm:$0xff]  ;;  %v56_v9 = vsel %vm33_vm0, %v52_v6, 0.0 }
  0x1c   :  { %v57_v10 = vadd.f32 %v56_v9, %v55_v7  ;;  %p123_p12 = pnand %p122_p11, %p116_p8 }
  0x1e   :  { %v58_v11 = vadd.f32 %v57_v10, %v53_v8 }
  0x20   :  { %59 = vst.msk [vmem:[#allocation2] sm:$0xff] %vm33_vm0, %v58_v11 }
  0x27   :  { %v63_v12 = vld [vmem:[#allocation2] sm:$0xff] }
  0x28   :  { %v64_v13 = vsel %vm33_vm0, %v63_v12, 0.0 }
  0x29   :  { %v65_v14 = vrot.slane %v64_v13, 4 }
  0x2b   :  { %v66_v15 = vadd.f32 %v65_v14, %v64_v13 }
  0x2d   :  { %v67_v16 = vrot.slane %v66_v15, 2 }
  0x2f   :  { %v68_v17 = vadd.f32 %v67_v16, %v66_v15 }
  0x31   :  { %v69_v18 = vrot.slane %v68_v17, 1 }
  0x33   :  { %v70_v19 = vadd.f32 %v69_v18, %v68_v17 }
  0x35   :  { %72 = vst.msk [vmem:[#allocation6] sm:$0x1] %vm71_vm2, %v70_v19 }
  0x36   :  { %126 = shalt.err (!%p123_p12)
}
  0x37   :  { %s127_s25 = scalar_lea.hbm %s186_s1, 16 }
  0x38   :  { %p128_p13 = scmp.ne.s32.totalorder %s186_s1, %s127_s25  ;;  %p131_p0 = scmp.lt.u32.totalorder %s127_s25, %s186_s1 }
  0x3a   :  { %p133_p1 = pnand %p131_p0, %p128_p13 }
  0x3c   :  { %136 = shalt.err (!%p133_p1)
}
  0x3d   :  { %82 = dma.vmem_to_hbm [thread:$0]  %s80_s20, 16, %s186_s1, [#allocation5]  }
  0x3e   :  { %139 = dma.done.wait [#allocation5], 16  }
  0x3f   :  { %140 = vsyncadd [#allocation5], 4294967280 }
  0x40   :  { %86 = vsyncpa [#allocation4], 1 }
  0x41   :  { %87 = vsyncpa [#allocation5], 1 }

</bundles_post_ra>
